<compile_context>
chip_gen: v5e
topology: v5e:2x2
jax: 0.10.0
libtpu: 0.0.40
codegen_flags: <defaults>
</compile_context>

<pallas_src>
import jax
import jax.numpy as jnp
from jax import lax
from jax.experimental import pallas as pl
from jax.experimental.pallas import tpu as pltpu


# --------------------------------------------------------------------------- #
# Kernel
# --------------------------------------------------------------------------- #
def _waypoly_kernel(x_ref, w_ref, b_ref, out_ref):
    """Fused WayPoly block for one batch element (folded, lane-dense layout).

    x_ref  : (1, rows, L)   input image, rows = H/R super-rows, L = R*W*C lanes
    w_ref  : (3, L, L)      banded conv operators for super-row offsets -1,0,+1
                            (module weights pre-summed, identity folded in)
    b_ref  : (1, L)         pre-summed biases, tiled over the folded lanes (f32)
    out_ref: (1, rows, L)   WayPoly output  x + sum_m conv_m(x) + sum_m b_m
    """
    rows = x_ref.shape[1]
    L = x_ref.shape[2]

    x = x_ref[0]                                           # (rows, L)

    # Zero halo in the H (super-row) direction, built in-register (no HBM pad).
    zero = jnp.zeros((1, L), x.dtype)
    xp = jnp.concatenate([zero, x, zero], axis=0)          # (rows + 2, L)

    # Three banded MXU matmuls, f32 accumulation; bias added once.
    acc = (jnp.dot(xp[0:rows], w_ref[0], preferred_element_type=jnp.float32)
           + jnp.dot(xp[1:rows + 1], w_ref[1], preferred_element_type=jnp.float32)
           + jnp.dot(xp[2:rows + 2], w_ref[2], preferred_element_type=jnp.float32)
           + b_ref[...])

    out_ref[0] = acc.astype(out_ref.dtype)                 # single dense store


# --------------------------------------------------------------------------- #
# Wrapper-side operator construction (pure JAX, traced once)
# --------------------------------------------------------------------------- #
def _build_folded_weights(weights, biases, W, C, R):
    """Pre-sum modules, fold identity, and build the banded conv operators."""
    # Conv is linear in the weights: sum_m conv(x, W_m) = conv(x, sum_m W_m).
    K = sum(w.astype(jnp.float32) for w in weights)                 # (3,3,C,C) HWIO
    # Identity path rides through the centre tap.
    K = K.at[1, 1].add(jnp.eye(C, dtype=jnp.float32))

    WC = W * C
    L = R * WC

    # Per-kernel-row band over one folded image row:
    #   Brow[kh][w*C+ci, w2*C+co] = K[kh, kw, ci, co]  with kw = w - w2 + 1,
    # i.e. nonzero only for |w - w2| <= 1 ("same" padding in W is implicit).
    brow = []
    for kh in range(3):
        m = jnp.zeros((WC, WC), jnp.float32)
        for kw in range(3):
            m = m + jnp.kron(jnp.eye(W, k=1 - kw, dtype=jnp.float32), K[kh, kw])
        brow.append(m)

    # Fold R image rows per matmul row (super-rows).  Contribution of input
    # super-row i+s to output super-row i:
    #   B[s][r*WC+.., r2*WC+..] = Brow[kh]  with kh = s*R + r - r2 + 1.
    bands = []
    for s in (-1, 0, 1):
        m = jnp.zeros((L, L), jnp.float32)
        for kh in range(3):
            m = m + jnp.kron(jnp.eye(R, k=s * R + 1 - kh, dtype=jnp.float32),
                             brow[kh])
        bands.append(m)
    B = jnp.stack(bands)                                            # (3, L, L)

    b_sum = sum(b.astype(jnp.float32) for b in biases)              # (C,)
    b_row = jnp.tile(b_sum, R * W).reshape(1, L)                    # (1, L)
    return B, b_row


def waypoly_conv3x3(x_nhwc, weights, biases):
    """WayPoly with 3x3 'same' convs:  out = x + sum_i (conv_i(x) + b_i)."""
    N, H, W, C = x_nhwc.shape
    M = len(weights)
    if M == 0:
        return x_nhwc                       # empty WayPoly acts as identity

    WC = W * C
    # Fold R image rows per matmul row so the lane dim is >= 128 (lane dense).
    R = 1
    for r in range(1, H + 1):
        if H % r == 0 and r * WC <= 1024:
            R = r
            if r * WC >= 128:
                break
    L = R * WC
    rows = H // R

    B, b_row = _build_folded_weights(weights, biases, W, C, R)
    x_fold = x_nhwc.reshape(N, rows, L)     # pure reshape (row-major NHWC)

    out = pl.pallas_call(
        _waypoly_kernel,
        out_shape=jax.ShapeDtypeStruct((N, rows, L), x_nhwc.dtype),
        grid=(N,),
        in_specs=[
            pl.BlockSpec((1, rows, L), lambda n: (n, 0, 0)),
            pl.BlockSpec((3, L, L), lambda n: (0, 0, 0)),
            pl.BlockSpec((1, L), lambda n: (0, 0)),
        ],
        out_specs=pl.BlockSpec((1, rows, L), lambda n: (n, 0, 0)),
        compiler_params=pltpu.CompilerParams(
            dimension_semantics=("parallel",),
        ),
    )(x_fold, B, b_row)
    return out.reshape(N, H, W, C)


@jax.jit
def waypoly_forward(x_nchw, params):
    """WayPoly forward: x + F_1(x) + ... + F_M(x).  params = list of (w, b)."""
    x = jnp.transpose(x_nchw, (0, 2, 3, 1))     # NCHW -> NHWC (lane = channels)
    weights = [w for (w, _) in params]
    biases = [b for (_, b) in params]
    out = waypoly_conv3x3(x, weights, biases)
    return jnp.transpose(out, (0, 3, 1, 2))     # NHWC -> NCHW


# --------------------------------------------------------------------------- #
# Reference + test harness
# --------------------------------------------------------------------------- #
def _reference_waypoly(x_nchw, params):
    """Pure-JAX reference (lax.conv) for correctness checking."""
    x = jnp.transpose(x_nchw, (0, 2, 3, 1))
    dn = lax.conv_dimension_numbers(x.shape, params[0][0].shape,
                                    ("NHWC", "HWIO", "NHWC"))
    out = x
    for (w, b) in params:
        out = out + lax.conv_general_dilated(x, w, (1, 1), "SAME",
                                             dimension_numbers=dn) + b
    return jnp.transpose(out, (0, 3, 1, 2))


def _init_conv_params(key, c, num_modules=2):
    """Deterministic Conv2d(C, C, 3) params (PyTorch-like uniform init), HWIO."""
    params = []
    bound = 1.0 / (c * 3 * 3) ** 0.5
    for i in range(num_modules):
        kw_, kb_ = jax.random.split(jax.random.fold_in(key, i))
        w = jax.random.uniform(kw_, (3, 3, c, c), jnp.float32, -bound, bound)
        b = jax.random.uniform(kb_, (c,), jnp.float32, -bound, bound)
        params.append((w, b))
    return params


if __name__ == "__main__":
    key = jax.random.PRNGKey(0)
    kx, kp = jax.random.split(key)

    N, C, H, W = 2, 4, 16, 16
    x = jax.random.normal(kx, (N, C, H, W), jnp.float32)
    params = _init_conv_params(kp, C, num_modules=2)

    out = waypoly_forward(x, params)
    out = jax.block_until_ready(out)

    ref = _reference_waypoly(x, params)
    assert out.shape == (N, C, H, W)
    assert jnp.allclose(out, ref, atol=1e-4, rtol=1e-4), "mismatch vs JAX reference"

    print("KERNEL_OK")
</pallas_src>

<mosaic_0001>
module attributes {stable_mosaic.version = 11 : i64} {
  func.func @_waypoly_kernel(%arg0: i32, %arg1: memref<1x8x128xf32, #tpu.memory_space<vmem>>, %arg2: memref<3x128x128xf32, #tpu.memory_space<vmem>>, %arg3: memref<1x128xf32, #tpu.memory_space<vmem>>, %arg4: memref<1x8x128xf32, #tpu.memory_space<vmem>>) attributes {dimension_semantics = [#tpu.dimension_semantics<parallel>], iteration_bounds = array<i64: 2>, scalar_prefetch = 0 : i64, scratch_operands = 0 : i64, tpu.core_type = #tpu.core_type<tc>, window_params = [{transform_indices = @transform_0, window_bounds = array<i64: 1, 8, 128>}, {pipeline_mode = #tpu.pipeline_mode<synchronous>, transform_indices = @transform_1, window_bounds = array<i64: 3, 128, 128>}, {pipeline_mode = #tpu.pipeline_mode<synchronous>, transform_indices = @transform_2, window_bounds = array<i64: 1, 128>}, {transform_indices = @transform_3, window_bounds = array<i64: 1, 8, 128>}]} {
    %c0 = arith.constant 0 : index
    %c0_0 = arith.constant 0 : index
    %c0_1 = arith.constant 0 : index
    %0 = vector.load %arg1[%c0, %c0_0, %c0_1] : memref<1x8x128xf32, #tpu.memory_space<vmem>>, vector<1x8x128xf32>
    %1 = vector.shape_cast %0 : vector<1x8x128xf32> to vector<8x128xf32>
    %cst = arith.constant 0.000000e+00 : f32
    %2 = vector.broadcast %cst : f32 to vector<1x128xf32>
    %3 = tpu.concatenate %2, %1, %2 in 0 : vector<1x128xf32>, vector<8x128xf32>, vector<1x128xf32> -> vector<10x128xf32>
    %4 = vector.extract_strided_slice %3 {offsets = [0, 0], sizes = [8, 128], strides = [1, 1]} : vector<10x128xf32> to vector<8x128xf32>
    %c0_2 = arith.constant 0 : index
    %c0_3 = arith.constant 0 : index
    %c0_4 = arith.constant 0 : index
    %5 = vector.load %arg2[%c0_2, %c0_3, %c0_4] : memref<3x128x128xf32, #tpu.memory_space<vmem>>, vector<1x128x128xf32>
    %6 = vector.shape_cast %5 : vector<1x128x128xf32> to vector<128x128xf32>
    %cst_5 = arith.constant dense<0.000000e+00> : vector<8x128xf32>
    %7 = tpu.matmul %4, %6, %cst_5 {dimension_numbers = #tpu.dot_dimension_numbers<[1], [0], [0], [1], [0, 0, 1, 1], [], []>} : vector<8x128xf32>, vector<128x128xf32>, vector<8x128xf32> -> vector<8x128xf32>
    %8 = vector.extract_strided_slice %3 {offsets = [1, 0], sizes = [8, 128], strides = [1, 1]} : vector<10x128xf32> to vector<8x128xf32>
    %c1 = arith.constant 1 : index
    %c0_6 = arith.constant 0 : index
    %c0_7 = arith.constant 0 : index
    %9 = vector.load %arg2[%c1, %c0_6, %c0_7] : memref<3x128x128xf32, #tpu.memory_space<vmem>>, vector<1x128x128xf32>
    %10 = vector.shape_cast %9 : vector<1x128x128xf32> to vector<128x128xf32>
    %cst_8 = arith.constant dense<0.000000e+00> : vector<8x128xf32>
    %11 = tpu.matmul %8, %10, %cst_8 {dimension_numbers = #tpu.dot_dimension_numbers<[1], [0], [0], [1], [0, 0, 1, 1], [], []>} : vector<8x128xf32>, vector<128x128xf32>, vector<8x128xf32> -> vector<8x128xf32>
    %12 = arith.addf %7, %11 : vector<8x128xf32>
    %13 = vector.extract_strided_slice %3 {offsets = [2, 0], sizes = [8, 128], strides = [1, 1]} : vector<10x128xf32> to vector<8x128xf32>
    %c2 = arith.constant 2 : index
    %c0_9 = arith.constant 0 : index
    %c0_10 = arith.constant 0 : index
    %14 = vector.load %arg2[%c2, %c0_9, %c0_10] : memref<3x128x128xf32, #tpu.memory_space<vmem>>, vector<1x128x128xf32>
    %15 = vector.shape_cast %14 : vector<1x128x128xf32> to vector<128x128xf32>
    %cst_11 = arith.constant dense<0.000000e+00> : vector<8x128xf32>
    %16 = tpu.matmul %13, %15, %cst_11 {dimension_numbers = #tpu.dot_dimension_numbers<[1], [0], [0], [1], [0, 0, 1, 1], [], []>} : vector<8x128xf32>, vector<128x128xf32>, vector<8x128xf32> -> vector<8x128xf32>
    %17 = arith.addf %12, %16 : vector<8x128xf32>
    %c0_12 = arith.constant 0 : index
    %c0_13 = arith.constant 0 : index
    %18 = vector.load %arg3[%c0_12, %c0_13] : memref<1x128xf32, #tpu.memory_space<vmem>>, vector<1x128xf32>
    %19 = vector.broadcast %18 : vector<1x128xf32> to vector<8x128xf32>
    %20 = arith.addf %17, %19 : vector<8x128xf32>
    %c0_14 = arith.constant 0 : index
    %c0_15 = arith.constant 0 : index
    %c0_16 = arith.constant 0 : index
    %21 = vector.load %arg4[%c0_14, %c0_15, %c0_16] : memref<1x8x128xf32, #tpu.memory_space<vmem>>, vector<1x8x128xf32>
    %22 = vector.shape_cast %21 : vector<1x8x128xf32> to vector<8x128xf32>
    %23 = vector.shape_cast %20 : vector<8x128xf32> to vector<1x8x128xf32>
    tpu.vector_store %arg4[%c0_14, %c0_15, %c0_16], %23 {strides = array<i32>} : memref<1x8x128xf32, #tpu.memory_space<vmem>>, vector<1x8x128xf32>,
    return
  }
  func.func @transform_0(%arg0: i32) -> (i32, i32, i32) {
    %c0_i32 = arith.constant 0 : i32
    %c0_i32_0 = arith.constant 0 : i32
    %c0_i32_1 = arith.constant 0 : i32
    return %arg0, %c0_i32, %c0_i32_0 : i32, i32, i32
  }
  func.func @transform_1(%arg0: i32) -> (i32, i32, i32) {
    %c0_i32 = arith.constant 0 : i32
    %c0_i32_0 = arith.constant 0 : i32
    %c0_i32_1 = arith.constant 0 : i32
    %c0_i32_2 = arith.constant 0 : i32
    return %c0_i32, %c0_i32_0, %c0_i32_1 : i32, i32, i32
  }
  func.func @transform_2(%arg0: i32) -> (i32, i32) {
    %c0_i32 = arith.constant 0 : i32
    %c0_i32_0 = arith.constant 0 : i32
    %c0_i32_1 = arith.constant 0 : i32
    return %c0_i32, %c0_i32_0 : i32, i32
  }
  func.func @transform_3(%arg0: i32) -> (i32, i32, i32) {
    %c0_i32 = arith.constant 0 : i32
    %c0_i32_0 = arith.constant 0 : i32
    %c0_i32_1 = arith.constant 0 : i32
    return %arg0, %c0_i32, %c0_i32_0 : i32, i32, i32
  }
}

</mosaic_0001>

<bundles_post_ra>
// kernel: tile.8
= control target key start
LH: loop header
LB: loop body
LE: loop exit
PB: predicated region body
PF: predicated region fallthrough
CT: control target
= control target key end

     0   :  { %s40_s0 = inlined_call_operand.vmem [shape: f32[4], index: 0, kind: input, shape index: {}]   ;;  %s41_s1 = inlined_call_operand.vmem [shape: f32[32,4], index: 1, kind: output, shape index: {}]  }
   0x1   :  { %v4_v0 = vld [vmem:[%s40_s0] ss:$0 sm:$0xff] }
   0x2   :  { %5 = vst [vmem:[%s41_s1] sm:$0xff] %v4_v0 }
   0x3   :  { %12 = vst [vmem:[%s41_s1 + $0x8] sm:$0xff] %v4_v0 }
   0x4   :  { %13 = vst [vmem:[%s41_s1 + $0x10] sm:$0xff] %v4_v0 }
   0x5   :  { %14 = vst [vmem:[%s41_s1 + $0x18] sm:$0xff] %v4_v0 }

// kernel: tile.9
= control target key start
LH: loop header
LB: loop body
LE: loop exit
PB: predicated region body
PF: predicated region fallthrough
CT: control target
= control target key end

     0   :  { %s259_s10 = smov 124   ;;  %s260_s11 = smov 116   ;;  %vm3_vm0 = vcmask 31744   ;;  %vm9_vm1 = vcmask 1048544   ;;  %vm15_vm2 = vcmask 1015744   ;;  %vm21_vm3 = vcmask 982944   ;;  %s399_s0 = inlined_call_operand.vmem [shape: f32[32,4], index: 0, kind: input, shape index: {}]   ;;  %s400_s1 = inlined_call_operand.vmem [shape: f32[1,128], index: 1, kind: output, shape index: {}]  }
   0x1   :  { %v197_v0 = vld [vmem:[%s399_s0 + $0x1f] sm:$0x1]   ;;  %v199_v1 = vld [vmem:[%s399_s0 + $0x1d] sm:$0x1]   ;;  %v201_v2 = vld [vmem:[%s399_s0 + $0x1b] sm:$0x1]  }
   0x2   :  { %7 = vrot.lane.b32.xlu0 %v197_v0, %s259_s10  ;;  %19 = vrot.lane.b32.xlu1 %v199_v1, %s260_s11  ;;  %s261_s14 = smov 108   ;;  %v198_v3 = vld [vmem:[%s399_s0 + $0x1e] sm:$0x1]   ;;  %v200_v4 = vld [vmem:[%s399_s0 + $0x1c] sm:$0x1]   ;;  %s262_s19 = smov 120  }
   0x3   :  { %31 = vrot.lane.b32.xlu2 %v201_v2, %s261_s14  ;;  %s263_s20 = smov 112   ;;  %v202_v5 = vld [vmem:[%s399_s0 + $0x1a] sm:$0x1]   ;;  %s264_s23 = smov 104   ;;  %v203_v6 = vld [vmem:[%s399_s0 + $0x19] sm:$0x1]  }
   0x4   :  { %v204_v7 = vld [vmem:[%s399_s0 + $0x18] sm:$0x1]   ;;  %s265_s28 = smov 100   ;;  %s266_s29 = smov 96   ;;  %v205_v8 = vld [vmem:[%s399_s0 + $0x17] sm:$0x1]  }
   0x5   :  { %s267_s3 = smov 92   ;;  %v206_v9 = vld [vmem:[%s399_s0 + $0x16] sm:$0x1]   ;;  %v207_v10 = vld [vmem:[%s399_s0 + $0x15] sm:$0x1]   ;;  %s268_s8 = smov 88  }
   0x6   :  { %s269_s9 = smov 84   ;;  %v208_v11 = vld [vmem:[%s399_s0 + $0x14] sm:$0x1]   ;;  %s270_s12 = smov 80   ;;  %v209_v12 = vld [vmem:[%s399_s0 + $0x13] sm:$0x1]  }
   0x7   :  { %v210_v13 = vld [vmem:[%s399_s0 + $0x12] sm:$0x1]   ;;  %s271_s17 = smov 76   ;;  %s272_s18 = smov 72   ;;  %v211_v14 = vld [vmem:[%s399_s0 + $0x11] sm:$0x1]  }
   0x8   :  { %s273_s21 = smov 68   ;;  %v212_v15 = vld [vmem:[%s399_s0 + $0x10] sm:$0x1]   ;;  %v213_v16 = vld [vmem:[%s399_s0 + $0xf] sm:$0x1]   ;;  %s274_s26 = smov 64  }
   0x9   :  { %s275_s27 = smov 60   ;;  %v214_v17 = vld [vmem:[%s399_s0 + $0xe] sm:$0x1]   ;;  %s276_s30 = smov 56   ;;  %v215_v18 = vld [vmem:[%s399_s0 + $0xd] sm:$0x1]  }
   0xa   :  { %13 = vrot.lane.b32.xlu0 %v198_v3, %s262_s19  ;;  %25 = vrot.lane.b32.xlu1 %v200_v4, %s263_s20  ;;  %v216_v19 = vld [vmem:[%s399_s0 + $0xc] sm:$0x1]   ;;  %s277_s6 = smov 52   ;;  %s278_s7 = smov 48   ;;  %v217_v20 = vld [vmem:[%s399_s0 + $0xb] sm:$0x1]  }
   0xb   :  { %37 = vrot.lane.b32.xlu2 %v202_v5, %s264_s23  ;;  %s279_s10 = smov 44   ;;  %v218_v21 = vld [vmem:[%s399_s0 + $0xa] sm:$0x1]   ;;  %v219_v22 = vld [vmem:[%s399_s0 + $0x9] sm:$0x1]   ;;  %s280_s15 = smov 40  }
   0xc   :  { %s281_s16 = smov 36   ;;  %v220_v23 = vld [vmem:[%s399_s0 + $0x8] sm:$0x1]   ;;  %s282_s19 = smov 32   ;;  %v221_v24 = vld [vmem:[%s399_s0 + $0x7] sm:$0x1]  }
   0xd   :  { %v222_v25 = vld [vmem:[%s399_s0 + $0x6] sm:$0x1]   ;;  %s283_s24 = smov 28   ;;  %s284_s25 = smov 24   ;;  %v223_v26 = vld [vmem:[%s399_s0 + $0x5] sm:$0x1]  }
   0xe   :  { %v224_v27 = vld [vmem:[%s399_s0 + $0x4] sm:$0x1]   ;;  %v225_v28 = vld [vmem:[%s399_s0 + $0x3] sm:$0x1]   ;;  %s286_s4 = smov 16   ;;  %s287_s5 = smov 12  }
   0xf   :  { %v226_v29 = vld [vmem:[%s399_s0 + $0x2] sm:$0x1]   ;;  %v227_v30 = vld [vmem:[%s399_s0 + $0x1] sm:$0x1]   ;;  %s289_s11 = smov 4   ;;  %vm27_vm4 = vcmask 950144  }
  0x10   :  { %v2_v31 = vld [vmem:[%s399_s0] sm:$0x1]   ;;  %vm33_vm5 = vcmask 917344   ;;  %vm39_vm6 = vcmask 884544   ;;  %vm45_vm7 = vcmask 851744   ;;  %vm51_vm8 = vcmask 818944  }
  0x11   :  { %4 = vst.msk [vmem:[#allocation0] sm:$0x1] %vm3_vm0, %v2_v31   ;;  %vm57_vm9 = vcmask 786144   ;;  %vm63_vm10 = vcmask 753344   ;;  %vm69_vm11 = vcmask 720544   ;;  %vm75_vm12 = vcmask 687744  }
  0x12   :  { %43 = vrot.lane.b32.xlu0 %v203_v6, %s265_s28  ;;  %49 = vrot.lane.b32.xlu1 %v204_v7, %s266_s29  ;;  %s285_s28 = smov 20   ;;  %vm81_vm13 = vcmask 654944   ;;  %vm87_vm14 = vcmask 622144   ;;  %vm93_vm15 = vcmask 589344   ;;  %vm99_vm0 = vcmask 556544  }
  0x13   :  { %55 = vrot.lane.b32.xlu2 %v205_v8, %s267_s3 }
  0x1a   :  { %61 = vrot.lane.b32.xlu0 %v206_v9, %s268_s8  ;;  %67 = vrot.lane.b32.xlu1 %v207_v10, %s269_s9  ;;  %s288_s8 = smov 8  }
  0x1b   :  { %73 = vrot.lane.b32.xlu2 %v208_v11, %s270_s12 }
  0x22   :  { %79 = vrot.lane.b32.xlu0 %v209_v12, %s271_s17  ;;  %85 = vrot.lane.b32.xlu1 %v210_v13, %s272_s18 }
  0x23   :  { %91 = vrot.lane.b32.xlu2 %v211_v14, %s273_s21 }
  0x2a   :  { %97 = vrot.lane.b32.xlu0 %v212_v15, %s274_s26  ;;  %103 = vrot.lane.b32.xlu1 %v213_v16, %s275_s27 }
  0x2b   :  { %109 = vrot.lane.b32.xlu2 %v214_v17, %s276_s30 }
  0x32   :  { %115 = vrot.lane.b32.xlu0 %v215_v18, %s277_s6  ;;  %121 = vrot.lane.b32.xlu1 %v216_v19, %s278_s7 }
  0x33   :  { %127 = vrot.lane.b32.xlu2 %v217_v20, %s279_s10 }
  0x3a   :  { %133 = vrot.lane.b32.xlu0 %v218_v21, %s280_s15  ;;  %139 = vrot.lane.b32.xlu1 %v219_v22, %s281_s16 }
  0x3b   :  { %145 = vrot.lane.b32.xlu2 %v220_v23, %s282_s19 }
  0x42   :  { %151 = vrot.lane.b32.xlu0 %v221_v24, %s283_s24  ;;  %157 = vrot.lane.b32.xlu1 %v222_v25, %s284_s25 }
  0x43   :  { %163 = vrot.lane.b32.xlu2 %v223_v26, %s285_s28 }
  0x4a   :  { %169 = vrot.lane.b32.xlu0 %v224_v27, %s286_s4  ;;  %175 = vrot.lane.b32.xlu1 %v225_v28, %s287_s5 }
  0x4b   :  { %181 = vrot.lane.b32.xlu2 %v226_v29, %s288_s8 }
  0x52   :  { %187 = vrot.lane.b32.xlu0 %v227_v30, %s289_s11 }
  0x5d   :  { %v32_v32 = vpop.permute.xlu2 %31  }
  0x65   :  { %v38_v33 = vpop.permute.xlu2 %37  }
  0x6d   :  { %v56_v34 = vpop.permute.xlu2 %55  }
  0x74   :  { %v8_v35 = vpop.permute.xlu0 %7   ;;  %v20_v36 = vpop.permute.xlu1 %19  }
  0x75   :  { %10 = vst.msk [vmem:[#allocation0] sm:$0x1] %vm9_vm1, %v8_v35   ;;  %v74_v37 = vpop.permute.xlu2 %73   ;;  %vm105_vm1 = vcmask 523744  }
  0x7c   :  { %v14_v38 = vpop.permute.xlu0 %13   ;;  %v26_v39 = vpop.permute.xlu1 %25  }
  0x7d   :  { %16 = vst.msk [vmem:[#allocation0] sm:$0x1] %vm15_vm2, %v14_v38   ;;  %v92_v40 = vpop.permute.xlu2 %91   ;;  %vm111_vm2 = vcmask 490944  }
  0x7e   :  { %22 = vst.msk [vmem:[#allocation0] sm:$0x1] %vm21_vm3, %v20_v36   ;;  %vm117_vm3 = vcmask 458144  }
  0x7f   :  { %28 = vst.msk [vmem:[#allocation0] sm:$0x1] %vm27_vm4, %v26_v39   ;;  %vm123_vm4 = vcmask 425344  }
  0x80   :  { %34 = vst.msk [vmem:[#allocation0] sm:$0x1] %vm33_vm5, %v32_v32   ;;  %vm129_vm5 = vcmask 392544  }
  0x81   :  { %40 = vst.msk [vmem:[#allocation0] sm:$0x1] %vm39_vm6, %v38_v33   ;;  %vm135_vm6 = vcmask 359744  }
  0x84   :  { %v44_v41 = vpop.permute.xlu0 %43   ;;  %v50_v42 = vpop.permute.xlu1 %49  }
  0x85   :  { %46 = vst.msk [vmem:[#allocation0] sm:$0x1] %vm45_vm7, %v44_v41   ;;  %v110_v43 = vpop.permute.xlu2 %109   ;;  %vm141_vm7 = vcmask 326944  }
  0x86   :  { %52 = vst.msk [vmem:[#allocation0] sm:$0x1] %vm51_vm8, %v50_v42   ;;  %vm147_vm8 = vcmask 294144  }
  0x87   :  { %58 = vst.msk [vmem:[#allocation0] sm:$0x1] %vm57_vm9, %v56_v34   ;;  %vm153_vm9 = vcmask 261344  }
  0x8c   :  { %v62_v44 = vpop.permute.xlu0 %61   ;;  %v68_v45 = vpop.permute.xlu1 %67  }
  0x8d   :  { %64 = vst.msk [vmem:[#allocation0] sm:$0x1] %vm63_vm10, %v62_v44   ;;  %v128_v46 = vpop.permute.xlu2 %127   ;;  %vm159_vm10 = vcmask 228544  }
  0x8e   :  { %70 = vst.msk [vmem:[#allocation0] sm:$0x1] %vm69_vm11, %v68_v45   ;;  %vm165_vm11 = vcmask 195744  }
  0x8f   :  { %76 = vst.msk [vmem:[#allocation0] sm:$0x1] %vm75_vm12, %v74_v37   ;;  %vm171_vm12 = vcmask 162944  }
  0x94   :  { %v80_v47 = vpop.permute.xlu0 %79   ;;  %v86_v48 = vpop.permute.xlu1 %85  }
  0x95   :  { %82 = vst.msk [vmem:[#allocation0] sm:$0x1] %vm81_vm13, %v80_v47   ;;  %v146_v49 = vpop.permute.xlu2 %145   ;;  %vm177_vm13 = vcmask 130144  }
  0x96   :  { %88 = vst.msk [vmem:[#allocation0] sm:$0x1] %vm87_vm14, %v86_v48   ;;  %vm183_vm14 = vcmask 97344  }
  0x97   :  { %94 = vst.msk [vmem:[#allocation0] sm:$0x1] %vm93_vm15, %v92_v40   ;;  %vm189_vm15 = vcmask 64544  }
  0x9c   :  { %v98_v50 = vpop.permute.xlu0 %97   ;;  %v104_v51 = vpop.permute.xlu1 %103  }
  0x9d   :  { %100 = vst.msk [vmem:[#allocation0] sm:$0x1] %vm99_vm0, %v98_v50   ;;  %v164_v52 = vpop.permute.xlu2 %163  }
  0x9e   :  { %106 = vst.msk [vmem:[#allocation0] sm:$0x1] %vm105_vm1, %v104_v51  }
  0x9f   :  { %112 = vst.msk [vmem:[#allocation0] sm:$0x1] %vm111_vm2, %v110_v43  }
  0xa4   :  { %v116_v53 = vpop.permute.xlu0 %115   ;;  %v122_v54 = vpop.permute.xlu1 %121  }
  0xa5   :  { %118 = vst.msk [vmem:[#allocation0] sm:$0x1] %vm117_vm3, %v116_v53   ;;  %v182_v55 = vpop.permute.xlu2 %181  }
  0xa6   :  { %124 = vst.msk [vmem:[#allocation0] sm:$0x1] %vm123_vm4, %v122_v54  }
  0xa7   :  { %130 = vst.msk [vmem:[#allocation0] sm:$0x1] %vm129_vm5, %v128_v46  }
  0xac   :  { %v134_v56 = vpop.permute.xlu0 %133   ;;  %v140_v57 = vpop.permute.xlu1 %139  }
  0xad   :  { %136 = vst.msk [vmem:[#allocation0] sm:$0x1] %vm135_vm6, %v134_v56  }
  0xae   :  { %142 = vst.msk [vmem:[#allocation0] sm:$0x1] %vm141_vm7, %v140_v57  }
  0xaf   :  { %148 = vst.msk [vmem:[#allocation0] sm:$0x1] %vm147_vm8, %v146_v49  }
  0xb4   :  { %v152_v58 = vpop.permute.xlu0 %151   ;;  %v158_v59 = vpop.permute.xlu1 %157  }
  0xb5   :  { %154 = vst.msk [vmem:[#allocation0] sm:$0x1] %vm153_vm9, %v152_v58  }
  0xb6   :  { %160 = vst.msk [vmem:[#allocation0] sm:$0x1] %vm159_vm10, %v158_v59  }
  0xb7   :  { %166 = vst.msk [vmem:[#allocation0] sm:$0x1] %vm165_vm11, %v164_v52  }
  0xbc   :  { %v170_v60 = vpop.permute.xlu0 %169   ;;  %v176_v61 = vpop.permute.xlu1 %175  }
  0xbd   :  { %172 = vst.msk [vmem:[#allocation0] sm:$0x1] %vm171_vm12, %v170_v60  }
  0xbe   :  { %178 = vst.msk [vmem:[#allocation0] sm:$0x1] %vm177_vm13, %v176_v61  }
  0xbf   :  { %184 = vst.msk [vmem:[#allocation0] sm:$0x1] %vm183_vm14, %v182_v55  }
  0xc4   :  { %v188_v62 = vpop.permute.xlu0 %187  }
  0xc5   :  { %190 = vst.msk [vmem:[#allocation0] sm:$0x1] %vm189_vm15, %v188_v62  }
  0xcc   :  { %v193_v63 = vld [vmem:[#allocation0] sm:$0x1] }
  0xcd   :  { %196 = vst [vmem:[%s400_s1] sm:$0x1] %v193_v63 }

// kernel: waypoly_forward.1
= control target key start
LH: loop header
LB: loop body
LE: loop exit
PB: predicated region body
PF: predicated region fallthrough
CT: control target
= control target key end

     0   :  { %s435_s12 = smov 0   ;;  %s615_s0 = inlined_call_operand.vmem [shape: f32[2,8,128], index: 0, kind: input, shape index: {}]   ;;  %s616_s1 = inlined_call_operand.vmem [shape: f32[3,128,128], index: 1, kind: input, shape index: {}]   ;;  %s617_s2 = inlined_call_operand.vmem [shape: f32[1,128], index: 2, kind: input, shape index: {}]   ;;  %s618_s3 = inlined_call_operand.vmem [shape: f32[2,8,128], index: 3, kind: output, shape index: {}]  }
   0x1 LB: > { %s355_s13 = sadd.s32 4294967295, %s413_s12   ;;  %p359_p0 = scmp.ge.s32.totalorder %s413_s12, 1  ;;  %s413_s12 = sphi %s435_s12, %s13_s12  }
   0x2   : > { %p136_p1 = scmp.lt.s32.totalorder %s413_s12, 3 }
   0x4   : > { %p137_p2 = pnand %p359_p0, %p136_p1 }
   0x5   : > { %p458_p3 = scmp.lt.s32.totalorder (!%p137_p2), %s355_s13, 1 }
   0x6   : > { %140 = sbr.rel (%p137_p2) target bundleno = 180 (0xb4), region = 32 }
   0xb   : > { %v395_v0 = vld [vmem:[%s616_s1 + $0x178] sm:$0xff]  ;;  %v394_v1 = vld [vmem:[%s616_s1 + $0x170] sm:$0xff]  ;;  %v393_v5 = vld [vmem:[%s616_s1 + $0x168] sm:$0xff]  ;;  %s621_s13 = smov (!%p458_p3, %s355_s13), 1  ;;  %vm170_vm0 = vcmask 1040384   ;;  %vm270_vm1 = vcmask 1045504  }
   0xc   : > { %v377_v2 = vld [vmem:[%s616_s1 + $0xf8] sm:$0xff]  ;;  %275 = vmatpush.msra.mxu2 %v395_v0  ;;  %v376_v4 = vld [vmem:[%s616_s1 + $0xf0] sm:$0xff]  ;;  %v375_v7 = vld [vmem:[%s616_s1 + $0xe8] sm:$0xff]  ;;  %s360_s26 = sshll.u32 %s621_s13, 3  ;;  %vm208_vm2 = vcmask 1046528  }
   0xd   : > { %213 = vmatpush.msra.mxu0 %v377_v2  ;;  %v188_v3 = vld [vmem:[%s616_s1 + $0x78] sm:$0xff]  ;;  %v187_v6 = vld [vmem:[%s616_s1 + $0x70] sm:$0xff]  ;;  %v186_v8 = vld [vmem:[%s616_s1 + $0x68] sm:$0xff]  ;;  %s161_s14 = scalar_lea.vmem %s615_s0, %s360_s26  ;;  %s165_s21 = scalar_lea.vmem %s618_s3, %s360_s26 }
   0xe   : > { %233 = vmatpush.msra.mxu1 %v188_v3  ;;  %276 = vmatpush.msra.mxu2 %v394_v1  ;;  %v392_v9 = vld [vmem:[%s616_s1 + $0x160] sm:$0xff]  ;;  %v391_v12 = vld [vmem:[%s616_s1 + $0x158] sm:$0xff]  ;;  %v390_v15 = vld [vmem:[%s616_s1 + $0x150] sm:$0xff] }
   0xf   : > { %214 = vmatpush.msra.mxu0 %v376_v4  ;;  %v374_v10 = vld [vmem:[%s616_s1 + $0xe0] sm:$0xff]  ;;  %v373_v13 = vld [vmem:[%s616_s1 + $0xd8] sm:$0xff]  ;;  %v372_v16 = vld [vmem:[%s616_s1 + $0xd0] sm:$0xff] }
  0x10   : > { %234 = vmatpush.msra.mxu1 %v187_v6  ;;  %277 = vmatpush.msra.mxu2 %v393_v5  ;;  %v185_v11 = vld [vmem:[%s616_s1 + $0x60] sm:$0xff]  ;;  %v184_v14 = vld [vmem:[%s616_s1 + $0x58] sm:$0xff]  ;;  %v183_v17 = vld [vmem:[%s616_s1 + $0x50] sm:$0xff] }
  0x11   : > { %215 = vmatpush.msra.mxu0 %v375_v7  ;;  %v389_v18 = vld [vmem:[%s616_s1 + $0x148] sm:$0xff]  ;;  %v388_v21 = vld [vmem:[%s616_s1 + $0x140] sm:$0xff]  ;;  %v387_v24 = vld [vmem:[%s616_s1 + $0x138] sm:$0xff] }
  0x12   : > { %235 = vmatpush.msra.mxu1 %v186_v8  ;;  %278 = vmatpush.msra.mxu2 %v392_v9  ;;  %v371_v19 = vld [vmem:[%s616_s1 + $0xc8] sm:$0xff]  ;;  %v370_v22 = vld [vmem:[%s616_s1 + $0xc0] sm:$0xff]  ;;  %v369_v25 = vld [vmem:[%s616_s1 + $0xb8] sm:$0xff] }
  0x13   : > { %216 = vmatpush.msra.mxu0 %v374_v10  ;;  %v182_v20 = vld [vmem:[%s616_s1 + $0x48] sm:$0xff]  ;;  %v181_v23 = vld [vmem:[%s616_s1 + $0x40] sm:$0xff]  ;;  %v180_v26 = vld [vmem:[%s616_s1 + $0x38] sm:$0xff] }
  0x14   : > { %236 = vmatpush.msra.mxu1 %v185_v11  ;;  %279 = vmatpush.msra.mxu2 %v391_v12  ;;  %v166_v27 = vld [vmem:[%s161_s14] sm:$0xff]  ;;  %v386_v28 = vld [vmem:[%s616_s1 + $0x130] sm:$0xff]  ;;  %v385_v31 = vld [vmem:[%s616_s1 + $0x128] sm:$0xff] }
  0x15   : > { %217 = vmatpush.msra.mxu0 %v373_v13  ;;  %v368_v29 = vld [vmem:[%s616_s1 + $0xb0] sm:$0xff]  ;;  %v367_v32 = vld [vmem:[%s616_s1 + $0xa8] sm:$0xff]  ;;  %v168_v33 = vrot.slane %v166_v27, 7  ;;  %v384_v35 = vld [vmem:[%s616_s1 + $0x120] sm:$0xff] }
  0x16   : > { %237 = vmatpush.msra.mxu1 %v184_v14  ;;  %280 = vmatpush.msra.mxu2 %v390_v15  ;;  %v179_v30 = vld [vmem:[%s616_s1 + $0x30] sm:$0xff]  ;;  %v178_v34 = vld [vmem:[%s616_s1 + $0x28] sm:$0xff]  ;;  %v366_v36 = vld [vmem:[%s616_s1 + $0xa0] sm:$0xff] }
  0x17   : > { %218 = vmatpush.msra.mxu0 %v372_v16  ;;  %v177_v37 = vld [vmem:[%s616_s1 + $0x20] sm:$0xff]  ;;  %v383_v38 = vld [vmem:[%s616_s1 + $0x118] sm:$0xff]  ;;  %v171_v40 = vsel %vm170_vm0, 0.0, %v168_v33  ;;  %v172_v41 = vsel %vm170_vm0, %v168_v33, 0.0  ;;  %v382_v43 = vld [vmem:[%s616_s1 + $0x110] sm:$0xff] }
  0x18   : > { %238 = vmatpush.msra.mxu1 %v183_v17  ;;  %281 = vmatpush.msra.mxu2 %v389_v18  ;;  %v365_v39 = vld [vmem:[%s616_s1 + $0x98] sm:$0xff]  ;;  %v364_v44 = vld [vmem:[%s616_s1 + $0x90] sm:$0xff]  ;;  %v271_v46 = vrot.slane %v171_v40, 2  ;;  %v272_v47 = vrot.slane %v172_v41, 2  ;;  %v381_v48 = vld [vmem:[%s616_s1 + $0x108] sm:$0xff]  ;;  %v209_v50 = vrot.slane %v171_v40, 1 }
  0x19   : > { %219 = vmatpush.msra.mxu0 %v371_v19  ;;  %v176_v42 = vld [vmem:[%s616_s1 + $0x18] sm:$0xff]  ;;  %v175_v45 = vld [vmem:[%s616_s1 + $0x10] sm:$0xff]  ;;  %v363_v49 = vld [vmem:[%s616_s1 + $0x88] sm:$0xff]  ;;  %v210_v51 = vrot.slane %v172_v41, 1 }
  0x1a   : > { %239 = vmatpush.msra.mxu1 %v182_v20  ;;  %282 = vmatpush.msra.mxu2 %v388_v21  ;;  %v174_v52 = vld [vmem:[%s616_s1 + $0x8] sm:$0xff]  ;;  %v380_v53 = vld [vmem:[%s616_s1 + $0x100] sm:$0xff]  ;;  %v273_v55 = vsel %vm270_vm1, %v271_v46, %v272_v47  ;;  %vm378_vm3 = vmneg %vm170_vm0 }
  0x1b   : > { %220 = vmatpush.msra.mxu0 %v370_v22  ;;  %v362_v54 = vld [vmem:[%s616_s1 + $0x80] sm:$0xff]  ;;  %v211_v57 = vsel %vm208_vm2, %v209_v50, %v210_v51 }
  0x1c   : > { %240 = vmatpush.msra.mxu1 %v181_v23  ;;  %283 = vmatpush.msra.mxu2 %v387_v24  ;;  %v173_v56 = vld [vmem:[%s616_s1] sm:$0xff] }
  0x1d   : > { %221 = vmatpush.msra.mxu0 %v369_v25  ;;  %v406_v61 = vld [vmem:[%s617_s2] ss:$0 sm:$0xff] }
  0x1e   : > { %241 = vmatpush.msra.mxu1 %v180_v26  ;;  %284 = vmatpush.msra.mxu2 %v386_v28 }
  0x1f   : > { %222 = vmatpush.msra.mxu0 %v368_v29 }
  0x20   : > { %242 = vmatpush.msra.mxu1 %v179_v30  ;;  %285 = vmatpush.msra.mxu2 %v385_v31 }
  0x21   : > { %223 = vmatpush.msra.mxu0 %v367_v32 }
  0x22   : > { %243 = vmatpush.msra.mxu1 %v178_v34  ;;  %286 = vmatpush.msra.mxu2 %v384_v35 }
  0x23   : > { %224 = vmatpush.msra.mxu0 %v366_v36 }
  0x24   : > { %244 = vmatpush.msra.mxu1 %v177_v37  ;;  %287 = vmatpush.msra.mxu2 %v383_v38 }
  0x25   : > { %225 = vmatpush.msra.mxu0 %v365_v39 }
  0x26   : > { %245 = vmatpush.msra.mxu1 %v176_v42  ;;  %288 = vmatpush.msra.mxu2 %v382_v43 }
  0x27   : > { %226 = vmatpush.msra.mxu0 %v364_v44 }
  0x28   : > { %246 = vmatpush.msra.mxu1 %v175_v45  ;;  %289 = vmatpush.msra.mxu2 %v381_v48 }
  0x29   : > { %227 = vmatpush.msra.mxu0 %v363_v49 }
  0x2a   : > { %247 = vmatpush.msra.mxu1 %v174_v52  ;;  %290 = vmatpush.msra.mxu2 %v380_v53 }
  0x2b   : > { %228 = vmatpush.msra.mxu0 %v362_v54  ;;  %291 = vmatmul.f32.vlgmr.msra.gmra.mxu2 %v273_v55 }
  0x2c   : > { %248 = vmatpush.msra.mxu1 %v173_v56  ;;  %229 = vmatmul.f32.vlgmr.msra.gmra.mxu0 %v211_v57 }
  0x2d   : > { %379 = vmatmul.msk.f32.vlgmr.msra.gmra.mxu1 %vm378_vm3, %v168_v33 }
  0xa9   : > { %v230_v58 = vpop.f32.mrf.mxu0 }
  0xaa   : > { %v250_v59 = vpop.f32.mrf.mxu1 }
  0xab   : > { %v251_v60 = vadd.f32 %v250_v59, %v230_v58 }
  0xae   : > { %v292_v62 = vpop.f32.mrf.mxu2 }
  0xaf   : > { %v295_v63 = vadd.f32 %v292_v62, %v251_v60 }
  0xb1   : > { %v300_v0 = vadd.f32 %v406_v61, %v295_v63 }
  0xb3   : > { %301 = vst [vmem:[%s165_s21] sm:$0xff] %v300_v0 }
  0xb4 PF: > { %s13_s12 = sadd.s32 1, %s413_s12  }
  0xb5   : > { %p10_p4 = scmp.ge.s32.totalorder %s13_s12, 4  }
  0xb7   :  { %12 = sbr.rel (!%p10_p4) target bundleno = 1 (0x1), region = 64 }

</bundles_post_ra>
